<compile_context>
chip_gen: v7x
topology: tpu7x:2x2x1
jax: 0.10.0
libtpu: 0.0.40
codegen_flags: <defaults>
</compile_context>

<pallas_src>
from functools import partial

import jax
import jax.numpy as jnp
from jax.experimental import pallas as pl
from jax.experimental.pallas import tpu as pltpu

_HIDDEN_PAD = 128   # lane-aligned hidden width (zero-padding 100 -> 128 is exact)
_OUT_PAD = 128      # lane-aligned output width (padded logits forced to -1e30)
_CHUNK = 128        # rows per register-resident sub-chunk inside the kernel
_NEG_BIG = -1e30    # padded-logit bias: exp(-1e30 - m) == 0 in f32


def _round_up(n, m):
    return ((n + m - 1) // m) * m


def policy_net_kernel(x_ref, w1_ref, b1_ref, w2_ref, b2_ref, o_ref, *, chunk, n_chunks):
    # x:  (TB, in_dim)      w1: (in_dim, Hp)   b1: (1, Hp)
    # w2: (Hp, OUT_PAD)     b2: (1, OUT_PAD)   o:  (TB, OUT_PAD)
    in_dim = w1_ref.shape[0]  # static -> Python loop below unrolls

    # Hoist all weight/bias loads (broadcast sources) out of the chunk loop.
    b1 = b1_ref[...]                                    # (1, Hp)
    w1_rows = [w1_ref[k:k + 1, :] for k in range(in_dim)]
    w2 = w2_ref[...]                                    # (Hp, OUT_PAD)
    b2 = b2_ref[...]                                    # (1, OUT_PAD)

    def body(c, carry):
        r0 = pl.multiple_of(c * chunk, chunk)           # sublane-aligned row start
        x = x_ref[pl.ds(r0, chunk), :].astype(jnp.float32)   # x.type(torch.float32)

        # fc1 + ReLU on the VPU: contraction depth in_dim (=2) is tiny, so
        # broadcast multiply-adds beat an MXU fill/drain for this layer.
        h = b1
        for k in range(in_dim):
            h = h + x[:, k:k + 1] * w1_rows[k]          # (chunk, Hp)
        h = jnp.maximum(h, 0.0)                         # padded cols: ReLU(0) = 0

        # fc2 on the MXU: lane-aligned K=128 contraction, f32 accumulate.
        logits = jnp.dot(h, w2, preferred_element_type=jnp.float32) + b2

        # softmax over dim=1; padded logits are -1e30 -> exp == 0, so they
        # neither win the max nor contribute to the denominator.
        m = jnp.max(logits, axis=1, keepdims=True)
        e = jnp.exp(logits - m)
        denom = jnp.sum(e, axis=1, keepdims=True)
        o_ref[pl.ds(r0, chunk), :] = e / denom          # exact normalization
        return carry

    jax.lax.fori_loop(0, n_chunks, body, None, unroll=True)


def policy_net_forward(x, w1, b1, w2, b2, *, out_dim=5, batch_tile=2048):
    """x: (B, in_dim). Weights must already be padded via prepare_params()."""
    x = x.astype(jnp.float32)
    B, in_dim = x.shape
    out_pad = w2.shape[1]

    # --- batch-tile selection --------------------------------------------
    B8 = _round_up(B, 8)
    tb = max(8, min(_round_up(batch_tile, 8), B8))
    if B8 >= 16 and tb >= B8:
        # Split into >= 2 grid steps so both v7x TensorCores get work.
        tb = _round_up((B8 + 1) // 2, 8)
    if tb > _CHUNK:
        tb = _round_up(tb, _CHUNK)       # inner chunk must divide the tile
        chunk = _CHUNK
    else:
        chunk = tb
    n_chunks = tb // chunk

    B_pad = _round_up(B, tb)
    if B_pad != B:
        # Zero rows -> valid (discarded) softmax rows, sliced off below.
        x = jnp.pad(x, ((0, B_pad - B), (0, 0)))

    out = pl.pallas_call(
        partial(policy_net_kernel, chunk=chunk, n_chunks=n_chunks),
        out_shape=jax.ShapeDtypeStruct((B_pad, out_pad), jnp.float32),
        grid=(B_pad // tb,),
        in_specs=[
            pl.BlockSpec((tb, in_dim), lambda i: (i, 0)),   # pipelined over batch
            pl.BlockSpec(w1.shape, lambda i: (0, 0)),       # weights stay VMEM-resident
            pl.BlockSpec(b1.shape, lambda i: (0, 0)),
            pl.BlockSpec(w2.shape, lambda i: (0, 0)),
            pl.BlockSpec(b2.shape, lambda i: (0, 0)),
        ],
        out_specs=pl.BlockSpec((tb, out_pad), lambda i: (i, 0)),  # lane-dense stores
        compiler_params=pltpu.CompilerParams(
            dimension_semantics=("parallel",),              # v7x megacore sharding
        ),
    )(x, w1, b1, w2, b2)
    return out[:B, :out_dim]


def init_params(key, input_dim=2, hidden=100, output_dim=5):
    # nn.Linear default init: U(-1/sqrt(fan_in), 1/sqrt(fan_in)); stored (in, out).
    k1, k2, k3, k4 = jax.random.split(key, 4)
    lim1 = 1.0 / jnp.sqrt(jnp.float32(input_dim))
    lim2 = 1.0 / jnp.sqrt(jnp.float32(hidden))
    w1 = jax.random.uniform(k1, (input_dim, hidden), jnp.float32, -lim1, lim1)
    b1 = jax.random.uniform(k2, (1, hidden), jnp.float32, -lim1, lim1)
    w2 = jax.random.uniform(k3, (hidden, output_dim), jnp.float32, -lim2, lim2)
    b2 = jax.random.uniform(k4, (1, output_dim), jnp.float32, -lim2, lim2)
    return w1, b1, w2, b2


def prepare_params(w1, b1, w2, b2, hidden_pad=_HIDDEN_PAD, out_pad=_OUT_PAD):
    """Pad hidden dim (exactly: padded units have zero pre-activation and zero
    w2 rows) and output dim (padded logits biased to -1e30 so exp -> 0)."""
    hidden = w1.shape[1]
    out_dim = w2.shape[1]
    hp = max(hidden_pad - hidden, 0)
    op = max(out_pad - out_dim, 0)
    w1p = jnp.pad(w1, ((0, 0), (0, hp)))
    b1p = jnp.pad(b1, ((0, 0), (0, hp)))
    w2p = jnp.pad(w2, ((0, hp), (0, op)))
    b2p = jnp.pad(b2, ((0, 0), (0, op)), constant_values=_NEG_BIG)
    return w1p, b1p, w2p, b2p


def reference_forward(x, w1, b1, w2, b2):
    x = x.astype(jnp.float32)
    h = jnp.maximum(x @ w1 + b1, 0.0)
    return jax.nn.softmax(h @ w2 + b2, axis=1)


if __name__ == "__main__":
    key = jax.random.PRNGKey(0)
    kx, kp = jax.random.split(key)

    B, input_dim, hidden, output_dim = 2, 2, 100, 5
    x = jax.random.normal(kx, (B, input_dim), dtype=jnp.float32)
    w1, b1, w2, b2 = init_params(kp, input_dim, hidden, output_dim)
    w1p, b1p, w2p, b2p = prepare_params(w1, b1, w2, b2)

    out = policy_net_forward(x, w1p, b1p, w2p, b2p, out_dim=output_dim)
    out = jax.block_until_ready(out)
    ref = reference_forward(x, w1, b1, w2, b2)

    assert out.shape == (B, output_dim)
    # Exact normalization: rows sum to 1 to f32 rounding.
    assert jnp.allclose(jnp.sum(out, axis=1), 1.0, atol=1e-5)
    assert jnp.allclose(out, ref, atol=2e-3)

    # Larger batch: exercises multi-step grid, batch padding and inner chunking.
    B2 = 300
    x2 = jax.random.normal(jax.random.PRNGKey(1), (B2, input_dim), dtype=jnp.float32)
    out2 = jax.block_until_ready(
        policy_net_forward(x2, w1p, b1p, w2p, b2p, out_dim=output_dim))
    ref2 = reference_forward(x2, w1, b1, w2, b2)
    assert out2.shape == (B2, output_dim)
    assert jnp.allclose(jnp.sum(out2, axis=1), 1.0, atol=1e-5)
    assert jnp.allclose(out2, ref2, atol=2e-3)

    print("KERNEL_OK")
</pallas_src>

<mosaic_0001>
module attributes {stable_mosaic.version = 11 : i64} {
  func.func @policy_net_kernel(%arg0: i32, %arg1: memref<8x2xf32, #tpu.memory_space<vmem>>, %arg2: memref<2x128xf32, #tpu.memory_space<vmem>>, %arg3: memref<1x128xf32, #tpu.memory_space<vmem>>, %arg4: memref<128x128xf32, #tpu.memory_space<vmem>>, %arg5: memref<1x128xf32, #tpu.memory_space<vmem>>, %arg6: memref<8x128xf32, #tpu.memory_space<vmem>>) attributes {dimension_semantics = [#tpu.dimension_semantics<parallel>], iteration_bounds = array<i64: 1>, scalar_prefetch = 0 : i64, scratch_operands = 0 : i64, tpu.core_type = #tpu.core_type<tc>, window_params = [{transform_indices = @transform_0, window_bounds = array<i64: 8, 2>}, {pipeline_mode = #tpu.pipeline_mode<synchronous>, transform_indices = @transform_1, window_bounds = array<i64: 2, 128>}, {pipeline_mode = #tpu.pipeline_mode<synchronous>, transform_indices = @transform_2, window_bounds = array<i64: 1, 128>}, {pipeline_mode = #tpu.pipeline_mode<synchronous>, transform_indices = @transform_3, window_bounds = array<i64: 128, 128>}, {pipeline_mode = #tpu.pipeline_mode<synchronous>, transform_indices = @transform_4, window_bounds = array<i64: 1, 128>}, {transform_indices = @transform_5, window_bounds = array<i64: 8, 128>}]} {
    %c0 = arith.constant 0 : index
    %c0_0 = arith.constant 0 : index
    %0 = vector.load %arg3[%c0, %c0_0] : memref<1x128xf32, #tpu.memory_space<vmem>>, vector<1x128xf32>
    %c0_1 = arith.constant 0 : index
    %c0_2 = arith.constant 0 : index
    %1 = vector.load %arg2[%c0_1, %c0_2] : memref<2x128xf32, #tpu.memory_space<vmem>>, vector<1x128xf32>
    %c1 = arith.constant 1 : index
    %c0_3 = arith.constant 0 : index
    %2 = vector.load %arg2[%c1, %c0_3] : memref<2x128xf32, #tpu.memory_space<vmem>>, vector<1x128xf32>
    %c0_4 = arith.constant 0 : index
    %c0_5 = arith.constant 0 : index
    %3 = vector.load %arg4[%c0_4, %c0_5] : memref<128x128xf32, #tpu.memory_space<vmem>>, vector<128x128xf32>
    %c0_6 = arith.constant 0 : index
    %c0_7 = arith.constant 0 : index
    %4 = vector.load %arg5[%c0_6, %c0_7] : memref<1x128xf32, #tpu.memory_space<vmem>>, vector<1x128xf32>
    %c0_i32 = arith.constant 0 : i32
    %c8_i32 = arith.constant 8 : i32
    %5 = arith.muli %c0_i32, %c8_i32 : i32
    %6 = tpu.assume_multiple %5, 8 : i32
    %7 = arith.index_cast %6 : i32 to index
    %c0_8 = arith.constant 0 : index
    %8 = vector.load %arg1[%7, %c0_8] : memref<8x2xf32, #tpu.memory_space<vmem>>, vector<8x2xf32>
    %9 = vector.extract_strided_slice %8 {offsets = [0, 0], sizes = [8, 1], strides = [1, 1]} : vector<8x2xf32> to vector<8x1xf32>
    %10 = vector.broadcast %9 : vector<8x1xf32> to vector<8x128xf32>
    %11 = vector.broadcast %1 : vector<1x128xf32> to vector<8x128xf32>
    %12 = arith.mulf %10, %11 : vector<8x128xf32>
    %13 = vector.broadcast %0 : vector<1x128xf32> to vector<8x128xf32>
    %14 = arith.addf %13, %12 : vector<8x128xf32>
    %15 = vector.extract_strided_slice %8 {offsets = [0, 1], sizes = [8, 1], strides = [1, 1]} : vector<8x2xf32> to vector<8x1xf32>
    %16 = vector.broadcast %15 : vector<8x1xf32> to vector<8x128xf32>
    %17 = vector.broadcast %2 : vector<1x128xf32> to vector<8x128xf32>
    %18 = arith.mulf %16, %17 : vector<8x128xf32>
    %19 = arith.addf %14, %18 : vector<8x128xf32>
    %cst = arith.constant 0.000000e+00 : f32
    %20 = vector.broadcast %cst : f32 to vector<8x128xf32>
    %21 = arith.maximumf %19, %20 : vector<8x128xf32>
    %cst_9 = arith.constant dense<0.000000e+00> : vector<8x128xf32>
    %22 = tpu.matmul %21, %3, %cst_9 {dimension_numbers = #tpu.dot_dimension_numbers<[1], [0], [0], [1], [0, 0, 1, 1], [], []>} : vector<8x128xf32>, vector<128x128xf32>, vector<8x128xf32> -> vector<8x128xf32>
    %23 = vector.broadcast %4 : vector<1x128xf32> to vector<8x128xf32>
    %24 = arith.addf %22, %23 : vector<8x128xf32>
    %cst_10 = arith.constant dense<0xFF800000> : vector<8xf32>
    %25 = vector.multi_reduction <maximumf>, %24, %cst_10 [1] : vector<8x128xf32> to vector<8xf32>
    %26 = vector.shape_cast %25 : vector<8xf32> to vector<8x1xf32>
    %27 = vector.broadcast %26 : vector<8x1xf32> to vector<8x128xf32>
    %28 = arith.subf %24, %27 : vector<8x128xf32>
    %29 = math.exp %28 : vector<8x128xf32>
    %cst_11 = arith.constant dense<0.000000e+00> : vector<8xf32>
    %30 = vector.multi_reduction <add>, %29, %cst_11 [1] : vector<8x128xf32> to vector<8xf32>
    %31 = vector.shape_cast %30 : vector<8xf32> to vector<8x1xf32>
    %32 = vector.broadcast %31 : vector<8x1xf32> to vector<8x128xf32>
    %33 = arith.divf %29, %32 : vector<8x128xf32>
    %34 = arith.index_cast %6 : i32 to index
    %c0_12 = arith.constant 0 : index
    %35 = vector.load %arg6[%34, %c0_12] : memref<8x128xf32, #tpu.memory_space<vmem>>, vector<8x128xf32>
    tpu.vector_store %arg6[%34, %c0_12], %33 {strides = array<i32>} : memref<8x128xf32, #tpu.memory_space<vmem>>, vector<8x128xf32>,
    %c1_i32 = arith.constant 1 : i32
    return
  }
  func.func @transform_0(%arg0: i32) -> (i32, i32) {
    %c0_i32 = arith.constant 0 : i32
    %c0_i32_0 = arith.constant 0 : i32
    return %arg0, %c0_i32 : i32, i32
  }
  func.func @transform_1(%arg0: i32) -> (i32, i32) {
    %c0_i32 = arith.constant 0 : i32
    %c0_i32_0 = arith.constant 0 : i32
    %c0_i32_1 = arith.constant 0 : i32
    return %c0_i32, %c0_i32_0 : i32, i32
  }
  func.func @transform_2(%arg0: i32) -> (i32, i32) {
    %c0_i32 = arith.constant 0 : i32
    %c0_i32_0 = arith.constant 0 : i32
    %c0_i32_1 = arith.constant 0 : i32
    return %c0_i32, %c0_i32_0 : i32, i32
  }
  func.func @transform_3(%arg0: i32) -> (i32, i32) {
    %c0_i32 = arith.constant 0 : i32
    %c0_i32_0 = arith.constant 0 : i32
    %c0_i32_1 = arith.constant 0 : i32
    return %c0_i32, %c0_i32_0 : i32, i32
  }
  func.func @transform_4(%arg0: i32) -> (i32, i32) {
    %c0_i32 = arith.constant 0 : i32
    %c0_i32_0 = arith.constant 0 : i32
    %c0_i32_1 = arith.constant 0 : i32
    return %c0_i32, %c0_i32_0 : i32, i32
  }
  func.func @transform_5(%arg0: i32) -> (i32, i32) {
    %c0_i32 = arith.constant 0 : i32
    %c0_i32_0 = arith.constant 0 : i32
    return %arg0, %c0_i32 : i32, i32
  }
}

</mosaic_0001>

<bundles_post_ra>
// kernel: tpu_custom_call.1
= control target key start
LH: loop header
LB: loop body
LE: loop exit
PB: predicated region body
PF: predicated region fallthrough
CT: control target
= control target key end

     0   :  { %10 = vsyncpa [#allocation3], 0  ;;  %s406_s0 = inlined_call_operand.vmem [shape: f32[8,2], index: 0, kind: input, shape index: {}]   ;;  %s407_s1 = inlined_call_operand.vmem [shape: f32[2,128], index: 1, kind: input, shape index: {}]   ;;  %s408_s2 = inlined_call_operand.vmem [shape: f32[1,128], index: 2, kind: input, shape index: {}]   ;;  %s409_s3 = inlined_call_operand.hbm [shape: f32[128,128], index: 3, kind: input, shape index: {}]   ;;  %s410_s4 = inlined_call_operand.vmem [shape: f32[1,128], index: 4, kind: input, shape index: {}]   ;;  %s411_s5 = inlined_call_operand.hbm [shape: f32[8,128], index: 5, kind: output, shape index: {}]  }
   0x1   :  { %11 = vsyncpa [#allocation4], 0  ;;  %s328_s18 = smov [#allocation2]   ;;  %s280_s22 = scalar_lea.hbm %s409_s3, 2048 }
   0x2   :  { %s23_s19 = sshll.u32 %s328_s18, 4  ;;  %p281_p0 = scmp.ne.s32.totalorder %s409_s3, %s280_s22  ;;  %s24_s19 = int_to_ptr.vmem [resolvable:$true] %s23_s19 }
   0x3   :  { %p284_p1 = scmp.lt.u32.totalorder %s280_s22, %s409_s3 }
   0x5   :  { %p286_p2 = pnand %p284_p1, %p281_p0 }
   0x7   :  { %289 = shalt.err (!%p286_p2)
}
   0x8   :  { %s290_s27 = scalar_lea.vmem %s24_s19, 2048  ;;  %p295_p4 = scmp.lt.s32.totalorder %s24_s19, %s24_s19 }
   0x9   :  { %p291_p3 = scmp.ne.s32.totalorder %s24_s19, %s290_s27  ;;  %p296_p5 = scmp.lt.s32.totalorder %s290_s27, %s290_s27 }
   0xb   :  { %p297_p6 = por %p296_p5, %p295_p4 }
   0xd   :  { %p298_p7 = pnand %p297_p6, %p291_p3 }
   0xf   :  { %301 = shalt.err (!%p298_p7)
}
  0x10   :  { %s329_s28 = smov 128   ;;  %s330_s29 = smov 8  }
  0x11   :  { %29 = dma.hbm_to_vmem [thread:$0]  %s409_s3, 2048, %s24_s19, [#allocation3], %s329_s28, %s329_s28, %s330_s29  }
  0x12   :  { %324 = dma.done.wait [#allocation3], 2048  }
  0x13   :  { %325 = vsyncadd [#allocation3], 4294965248  ;;  %v331_v0 = vmov 0   ;;  %v332_v1 = vmov 0.0|0.0   ;;  %v55_v2 = vld [vmem:[%s406_s0] sm:$0xff]  ;;  %v39_v4 = vld [vmem:[#allocation2 + $0x8] sm:$0xff] }
  0x14   :  { %274 = vset.pattern.permute.xlu0 %v331_v0  ;;  %241 = vmatprep.subr.bf16.mxu0 %v332_v1  ;;  %v38_v3 = vld [vmem:[#allocation2] sm:$0xff]  ;;  %v40_v6 = vld [vmem:[#allocation2 + $0x10] sm:$0xff]  ;;  %v41_v7 = vld [vmem:[#allocation2 + $0x18] sm:$0xff]  ;;  %v333_v11 = vmov 1   ;;  %vm334_vm0 = vmmov 0   ;;  %v335_v16 = vmov 0.0  }
  0x15   :  { %58 = vperm.xlu0 %274, %v55_v2   ;;  %v242_v5 = vpack.c.bf16 %v39_v4, %v38_v3  ;;  %v245_v8 = vpack.c.bf16 %v41_v7, %v40_v6  ;;  %v42_v9 = vld [vmem:[#allocation2 + $0x20] sm:$0xff]  ;;  %v43_v10 = vld [vmem:[#allocation2 + $0x28] sm:$0xff]  ;;  %v44_v13 = vld [vmem:[#allocation2 + $0x30] sm:$0xff]  ;;  %238 = vmatprep.mubr.msk.f32.mxu0 %vm334_vm0, %v335_v16 }
  0x16   :  { %v248_v12 = vpack.c.bf16 %v43_v10, %v42_v9  ;;  %v45_v14 = vld [vmem:[#allocation2 + $0x38] sm:$0xff]  ;;  %v46_v17 = vld [vmem:[#allocation2 + $0x40] sm:$0xff]  ;;  %v47_v18 = vld [vmem:[#allocation2 + $0x48] sm:$0xff] }
  0x17   :  { %243 = vmatpush3.bf16.msra.mxu0 %v242_v5  ;;  %v251_v15 = vpack.c.bf16 %v45_v14, %v44_v13  ;;  %v254_v19 = vpack.c.bf16 %v47_v18, %v46_v17  ;;  %v48_v20 = vld [vmem:[#allocation2 + $0x50] sm:$0xff]  ;;  %v49_v21 = vld [vmem:[#allocation2 + $0x58] sm:$0xff]  ;;  %v50_v23 = vld [vmem:[#allocation2 + $0x60] sm:$0xff] }
  0x18   :  { %244 = vmatprep.subr.bf16.mxu0 %v332_v1  ;;  %v257_v22 = vpack.c.bf16 %v49_v21, %v48_v20  ;;  %v51_v24 = vld [vmem:[#allocation2 + $0x68] sm:$0xff]  ;;  %v52_v26 = vld [vmem:[#allocation2 + $0x70] sm:$0xff]  ;;  %v53_v27 = vld [vmem:[#allocation2 + $0x78] sm:$0xff] }
  0x19   :  { %275 = vset.pattern.permute.xlu0 %v333_v11  ;;  %v260_v25 = vpack.c.bf16 %v51_v24, %v50_v23  ;;  %v263_v28 = vpack.c.bf16 %v53_v27, %v52_v26  ;;  %v185_v29 = vld [vmem:[%s407_s1] ss:$0 sm:$0xff]  ;;  %v187_v33 = vld [vmem:[%s407_s1 + $0x1] ss:$0 sm:$0xff]  ;;  %s336_s1 = smov [#allocation5]  }
  0x1a   :  { %74 = vperm.xlu0 %275, %v55_v2   ;;  %v186_v32 = vld [vmem:[%s408_s2] ss:$0 sm:$0xff]  ;;  %s176_s2 = sshll.u32 %s336_s1, 4  ;;  %s177_s2 = int_to_ptr.vmem [resolvable:$true] %s176_s2 }
  0x1b   :  { %246 = vmatpush3.bf16.msra.mxu0 %v245_v8  ;;  %v188_v39 = vld [vmem:[%s410_s4] ss:$0 sm:$0xff]  ;;  %s302_s15 = scalar_lea.vmem %s177_s2, 128  ;;  %p307_p9 = scmp.lt.s32.totalorder %s177_s2, %s177_s2 }
  0x1c   :  { %247 = vmatprep.subr.bf16.mxu0 %v332_v1  ;;  %p303_p8 = scmp.ne.s32.totalorder %s177_s2, %s302_s15  ;;  %p308_p10 = scmp.lt.s32.totalorder %s302_s15, %s302_s15 }
  0x1e   :  { %p309_p11 = por %p308_p10, %p307_p9 }
  0x1f   :  { %249 = vmatpush3.bf16.msra.mxu0 %v248_v12 }
  0x20   :  { %250 = vmatprep.subr.bf16.mxu0 %v332_v1  ;;  %p310_p12 = pnand %p309_p11, %p303_p8 }
  0x23   :  { %252 = vmatpush3.bf16.msra.mxu0 %v251_v15 }
  0x24   :  { %253 = vmatprep.subr.bf16.mxu0 %v332_v1 }
  0x27   :  { %255 = vmatpush3.bf16.msra.mxu0 %v254_v19 }
  0x28   :  { %256 = vmatprep.subr.bf16.mxu0 %v332_v1 }
  0x2b   :  { %258 = vmatpush3.bf16.msra.mxu0 %v257_v22 }
  0x2c   :  { %259 = vmatprep.subr.bf16.mxu0 %v332_v1 }
  0x2f   :  { %261 = vmatpush3.bf16.msra.mxu0 %v260_v25 }
  0x30   :  { %262 = vmatprep.subr.bf16.mxu0 %v332_v1 }
  0x33   :  { %264 = vmatpush3.bf16.msra.mxu0 %v263_v28 }
  0x94   :  { %v59_v30 = vpop.permute.xlu0 %58 }
  0x95   :  { %v65_v31 = vmul.f32 %v185_v29, %v59_v30 }
  0x97   :  { %v72_v35 = vadd.f32 %v186_v32, %v65_v31 }
  0x99   :  { %v75_v34 = vpop.permute.xlu0 %74 }
  0x9a   :  { %v81_v36 = vmul.f32 %v187_v33, %v75_v34 }
  0x9c   :  { %v82_v37 = vadd.f32 %v81_v36, %v72_v35 }
  0x9e   :  { %v83_v38 = vmax.f32 %v82_v37, 0.0 }
  0xa0   :  { %239 = vmatmul.mubr.f32.vlgmr.msra.gmra.mrb[0].mxu0 %v83_v38 }
 0x173   :  { %v156_v40 = vpop.f32.mrb[0].mxu0 }
 0x174   :  { %v157_v41 = vadd.f32 %v188_v39, %v156_v40  ;;  %v240_v42 = vpop.f32.mrb[1].mxu0 }
 0x176   :  { %160 = vmax.xlane.f32.xlu1 %v157_v41 }
 0x203   :  { %v161_v43 = vpop.xlane.xlu1 %160 }
 0x204   :  { %v162_v44 = vsub.f32 %v157_v41, %v161_v43 }
 0x206   :  { %v163_v45 = vmul.f32 1.442695, %v162_v44 }
 0x208   :  { %276 = vpow2.f32 %v163_v45 }
 0x212   :  { %v277_v46 = vpop.eup %276 }
 0x213   :  { %165 = vadd.xlane.f32.xlu1 %v277_v46 }
 0x2a0   :  { %v166_v47 = vpop.xlane.xlu1 %165 }
 0x2a1   :  { %278 = vrcp.f32 %v166_v47 }
 0x2ab   :  { %v279_v48 = vpop.eup %278 }
 0x2ac   :  { %v168_v49 = vmul.f32 %v279_v48, %v277_v46 }
 0x2ae   :  { %169 = vst [vmem:[#allocation5] sm:$0xff] %v168_v49 }
 0x2af   :  { %313 = shalt.err (!%p310_p12)
}
 0x2b0   :  { %s314_s17 = scalar_lea.hbm %s411_s5, 128 }
 0x2b1   :  { %p315_p13 = scmp.ne.s32.totalorder %s411_s5, %s314_s17  ;;  %p318_p0 = scmp.lt.u32.totalorder %s314_s17, %s411_s5 }
 0x2b3   :  { %p320_p1 = pnand %p318_p0, %p315_p13 }
 0x2b5   :  { %323 = shalt.err (!%p320_p1)
}
 0x2b6   :  { %179 = dma.vmem_to_hbm [thread:$0]  %s177_s2, 128, %s411_s5, [#allocation4]  }
 0x2b7   :  { %326 = dma.done.wait [#allocation4], 128  }
 0x2b8   :  { %327 = vsyncadd [#allocation4], 4294967168 }
 0x2b9   :  { %183 = vsyncpa [#allocation3], 1 }
 0x2ba   :  { %184 = vsyncpa [#allocation4], 1 }

</bundles_post_ra>
